<compile_context>
chip_gen: v7x
topology: tpu7x:2x2x1
jax: 0.10.0
libtpu: 0.0.40
codegen_flags: <defaults>
</compile_context>

<pallas_src>
import functools

import numpy as np
import jax
import jax.numpy as jnp
from jax.experimental import pallas as pl
from jax.experimental.pallas import tpu as pltpu


def _relu(x):
    return jnp.maximum(x, 0.0)


def _round_up(x, m):
    return (x + m - 1) // m * m


# --------------------------------------------------------------------------
# Kernel
# --------------------------------------------------------------------------
def encoder_kernel(p_ref, w_ref, out_ref, *, bb, t, dp, h2p, hp, zp, off):
    f32 = jnp.float32

    p = p_ref[...]                                            # (bb*t, dp), col D holds 1.0

    # fc_pos (bias rides in the matmul via the ones column)
    w_pos = w_ref[off["w_pos"]:off["w_pos"] + dp, :h2p]
    net = jnp.dot(p, w_pos, preferred_element_type=f32)       # (bb*t, h2p)

    # fc_0
    w0 = w_ref[off["w0"]:off["w0"] + h2p, :hp]
    b0 = w_ref[off["b0"]:off["b0"] + 1, :hp]
    net = jnp.dot(_relu(net), w0, preferred_element_type=f32) + b0   # (bb*t, hp)

    # fc_1 / fc_2 / fc_3 with the concat([net, pooled]) split into two matmuls
    for k in ("1", "2", "3"):
        wa = w_ref[off["w%sa" % k]:off["w%sa" % k] + hp, :hp]
        wb = w_ref[off["w%sb" % k]:off["w%sb" % k] + hp, :hp]
        b = w_ref[off["b%s" % k]:off["b%s" % k] + 1, :hp]

        # Pool pre-activation net over the T points (matches the reference).
        pooled = jnp.max(net.reshape(bb, t, hp), axis=1)              # (bb, hp)
        contrib = jnp.dot(_relu(pooled), wb,
                          preferred_element_type=f32) + b             # (bb, hp), bias folded
        net_wa = jnp.dot(_relu(net), wa, preferred_element_type=f32)  # (bb*t, hp)
        net = (net_wa.reshape(bb, t, hp)
               + contrib[:, None, :]).reshape(bb * t, hp)             # (bb*t, hp)

    # Final pool over points (no activation) + fused mean/logstd head.
    wh = w_ref[off["w_heads"]:off["w_heads"] + hp, :zp]
    bh = w_ref[off["b_heads"]:off["b_heads"] + 1, :zp]
    feat = jnp.max(net.reshape(bb, t, hp), axis=1)                    # (bb, hp)
    out_ref[...] = jnp.dot(feat, wh, preferred_element_type=f32) + bh  # (bb, zp) lane-dense


# --------------------------------------------------------------------------
# Weight packing
# --------------------------------------------------------------------------
def _pack_weights(params, D, H, Z):
    DP = 8                                  # padded point dim (col D carries the bias 1.0)
    H2P = _round_up(2 * H, 128)
    HP = _round_up(H, 128)
    ZP = _round_up(2 * Z, 128)
    LW = max(H2P, HP, ZP)

    pieces = []
    off = {}
    row = 0

    def add(name, mat, rows_target=None):
        nonlocal row
        r, c = mat.shape
        rp = rows_target if rows_target is not None else _round_up(r, 8)
        blk = jnp.zeros((rp, LW), jnp.float32).at[:r, :c].set(mat.astype(jnp.float32))
        pieces.append(blk)
        off[name] = row
        row += rp

    # fc_pos with b_pos folded into row D of the padded weight.
    w_pos_b = jnp.zeros((DP, 2 * H), jnp.float32)
    w_pos_b = w_pos_b.at[:D, :].set(params["w_pos"])
    w_pos_b = w_pos_b.at[D, :].set(params["b_pos"][0])
    add("w_pos", w_pos_b, rows_target=DP)

    add("w0", params["w0"], rows_target=H2P)
    add("b0", params["b0"])

    for k in ("1", "2", "3"):
        w = params["w" + k]                 # (2H, H): rows [:H] act on net, [H:] on pooled
        add("w%sa" % k, w[:H], rows_target=HP)
        add("w%sb" % k, w[H:], rows_target=HP)
        add("b%s" % k, params["b" + k])

    w_heads = jnp.concatenate([params["w_mean"], params["w_logstd"]], axis=1)   # (H, 2Z)
    b_heads = jnp.concatenate([params["b_mean"], params["b_logstd"]], axis=1)   # (1, 2Z)
    add("w_heads", w_heads, rows_target=HP)
    add("b_heads", b_heads)

    slab = jnp.concatenate(pieces, axis=0)      # (R_total, LW) f32, one DMA
    dims = dict(DP=DP, H2P=H2P, HP=HP, ZP=ZP)
    return slab, off, dims


def _choose_block_b(B, T):
    # Default: one grid step (single-TC chips, overhead-dominated sizes).
    # Split into 2 parallel steps (v7x megacore) only if each step still
    # carries >= 256 matmul rows and the output row block is a multiple of 8.
    half = B // 2
    if B % 2 == 0 and half % 8 == 0 and half * T >= 256:
        return half
    return B


# --------------------------------------------------------------------------
# Wrapper
# --------------------------------------------------------------------------
def encoder_forward(p, params, block_b=None):
    B, T, D = p.shape
    H = params["w0"].shape[1]
    Z = params["w_mean"].shape[1]

    slab, off, dims = _pack_weights(params, D, H, Z)
    DP, H2P, HP, ZP = dims["DP"], dims["H2P"], dims["HP"], dims["ZP"]

    if block_b is None:
        block_b = _choose_block_b(B, T)
    assert B % block_b == 0, "batch must be divisible by block_b"
    assert block_b == B or block_b % 8 == 0, \
        "block_b must equal B or be a multiple of 8 (output block row rule)"
    grid_b = B // block_b

    # Flatten points to (B*T, DP); column D carries 1.0 so b_pos rides the matmul.
    p_flat = p.reshape(B * T, D).astype(jnp.float32)
    p_pad = jnp.zeros((B * T, DP), jnp.float32)
    p_pad = p_pad.at[:, :D].set(p_flat).at[:, D].set(1.0)

    kernel = functools.partial(encoder_kernel, bb=block_b, t=T,
                               dp=DP, h2p=H2P, hp=HP, zp=ZP, off=off)

    out = pl.pallas_call(
        kernel,
        out_shape=jax.ShapeDtypeStruct((B, ZP), jnp.float32),
        grid_spec=pltpu.PrefetchScalarGridSpec(
            num_scalar_prefetch=0,
            grid=(grid_b,),
            in_specs=[
                pl.BlockSpec((block_b * T, DP), lambda i: (i, 0)),   # points
                pl.BlockSpec(slab.shape, lambda i: (0, 0)),          # packed weights (1 DMA)
            ],
            out_specs=pl.BlockSpec((block_b, ZP), lambda i: (i, 0)),
        ),
        compiler_params=pltpu.CompilerParams(
            dimension_semantics=("parallel",)),
    )(p_pad, slab)

    mean = out[:, :Z]
    logstd = out[:, Z:2 * Z]
    return mean, logstd


# --------------------------------------------------------------------------
# Pure-JAX reference (mirrors the PyTorch forward)
# --------------------------------------------------------------------------
def encoder_reference(p, params):
    def lin(x, w, b):
        return jnp.dot(x, w) + b

    net = lin(p, params["w_pos"], params["b_pos"])
    net = lin(_relu(net), params["w0"], params["b0"])

    for k in ("1", "2", "3"):
        pooled = jnp.max(net, axis=1, keepdims=True)
        pooled = jnp.broadcast_to(pooled, net.shape)
        net = lin(_relu(jnp.concatenate([net, pooled], axis=2)),
                  params["w" + k], params["b" + k])

    net = jnp.max(net, axis=1)                 # (B, H)
    mean = lin(net, params["w_mean"], params["b_mean"])
    logstd = lin(net, params["w_logstd"], params["b_logstd"])
    return mean, logstd


def init_params(key, dim=3, hidden_dim=32, z_dim=32):
    ks = jax.random.split(key, 7)

    def linear_init(k, fan_in, fan_out):
        kw, kb = jax.random.split(k)
        w = jax.random.normal(kw, (fan_in, fan_out), jnp.float32) / np.sqrt(fan_in)
        b = 0.01 * jax.random.normal(kb, (1, fan_out), jnp.float32)
        return w, b

    params = {}
    params["w_pos"], params["b_pos"] = linear_init(ks[0], dim, 2 * hidden_dim)
    params["w0"], params["b0"] = linear_init(ks[1], 2 * hidden_dim, hidden_dim)
    params["w1"], params["b1"] = linear_init(ks[2], 2 * hidden_dim, hidden_dim)
    params["w2"], params["b2"] = linear_init(ks[3], 2 * hidden_dim, hidden_dim)
    params["w3"], params["b3"] = linear_init(ks[4], 2 * hidden_dim, hidden_dim)
    params["w_mean"], params["b_mean"] = linear_init(ks[5], hidden_dim, z_dim)
    params["w_logstd"], params["b_logstd"] = linear_init(ks[6], hidden_dim, z_dim)
    return params


if __name__ == "__main__":
    key = jax.random.PRNGKey(0)
    k_p, k_w = jax.random.split(key)

    B, T, D = 4, 8, 3
    hidden_dim, z_dim = 32, 32

    p = jax.random.normal(k_p, (B, T, D), jnp.float32)
    params = init_params(k_w, dim=D, hidden_dim=hidden_dim, z_dim=z_dim)

    mean, logstd = encoder_forward(p, params)        # grid = 1 at this size
    jax.block_until_ready((mean, logstd))

    mean_ref, logstd_ref = encoder_reference(p, params)
    assert mean.shape == (B, z_dim) and logstd.shape == (B, z_dim)
    np.testing.assert_allclose(np.asarray(mean), np.asarray(mean_ref),
                               rtol=1e-5, atol=1e-5)
    np.testing.assert_allclose(np.asarray(logstd), np.asarray(logstd_ref),
                               rtol=1e-5, atol=1e-5)
    print("KERNEL_OK")
</pallas_src>

<mosaic_0001>
module attributes {stable_mosaic.version = 11 : i64} {
  func.func @encoder_kernel(%arg0: i32, %arg1: memref<32x8xf32, #tpu.memory_space<vmem>>, %arg2: memref<1072x128xf32, #tpu.memory_space<vmem>>, %arg3: memref<4x128xf32, #tpu.memory_space<vmem>>) attributes {dimension_semantics = [#tpu.dimension_semantics<parallel>], iteration_bounds = array<i64: 1>, scalar_prefetch = 0 : i64, scratch_operands = 0 : i64, tpu.core_type = #tpu.core_type<tc>, window_params = [{transform_indices = @transform_0, window_bounds = array<i64: 32, 8>}, {pipeline_mode = #tpu.pipeline_mode<synchronous>, transform_indices = @transform_1, window_bounds = array<i64: 1072, 128>}, {transform_indices = @transform_2, window_bounds = array<i64: 4, 128>}]} {
    %c0 = arith.constant 0 : index
    %c0_0 = arith.constant 0 : index
    %0 = vector.load %arg1[%c0, %c0_0] : memref<32x8xf32, #tpu.memory_space<vmem>>, vector<32x8xf32>
    %c0_1 = arith.constant 0 : index
    %c0_2 = arith.constant 0 : index
    %1 = vector.load %arg2[%c0_1, %c0_2] : memref<1072x128xf32, #tpu.memory_space<vmem>>, vector<8x128xf32>
    %cst = arith.constant dense<0.000000e+00> : vector<32x128xf32>
    %2 = tpu.matmul %0, %1, %cst {dimension_numbers = #tpu.dot_dimension_numbers<[1], [0], [0], [1], [0, 0, 1, 1], [], []>} : vector<32x8xf32>, vector<8x128xf32>, vector<32x128xf32> -> vector<32x128xf32>
    %c8 = arith.constant 8 : index
    %c0_3 = arith.constant 0 : index
    %3 = vector.load %arg2[%c8, %c0_3] : memref<1072x128xf32, #tpu.memory_space<vmem>>, vector<128x128xf32>
    %c136 = arith.constant 136 : index
    %c0_4 = arith.constant 0 : index
    %4 = vector.load %arg2[%c136, %c0_4] : memref<1072x128xf32, #tpu.memory_space<vmem>>, vector<1x128xf32>
    %cst_5 = arith.constant 0.000000e+00 : f32
    %5 = vector.broadcast %cst_5 : f32 to vector<32x128xf32>
    %6 = arith.maximumf %2, %5 : vector<32x128xf32>
    %cst_6 = arith.constant dense<0.000000e+00> : vector<32x128xf32>
    %7 = tpu.matmul %6, %3, %cst_6 {dimension_numbers = #tpu.dot_dimension_numbers<[1], [0], [0], [1], [0, 0, 1, 1], [], []>} : vector<32x128xf32>, vector<128x128xf32>, vector<32x128xf32> -> vector<32x128xf32>
    %8 = vector.broadcast %4 : vector<1x128xf32> to vector<32x128xf32>
    %9 = arith.addf %7, %8 : vector<32x128xf32>
    %c144 = arith.constant 144 : index
    %c0_7 = arith.constant 0 : index
    %10 = vector.load %arg2[%c144, %c0_7] : memref<1072x128xf32, #tpu.memory_space<vmem>>, vector<128x128xf32>
    %c272 = arith.constant 272 : index
    %c0_8 = arith.constant 0 : index
    %11 = vector.load %arg2[%c272, %c0_8] : memref<1072x128xf32, #tpu.memory_space<vmem>>, vector<128x128xf32>
    %c400 = arith.constant 400 : index
    %c0_9 = arith.constant 0 : index
    %12 = vector.load %arg2[%c400, %c0_9] : memref<1072x128xf32, #tpu.memory_space<vmem>>, vector<1x128xf32>
    %13 = vector.shape_cast %9 : vector<32x128xf32> to vector<4x8x128xf32>
    %cst_10 = arith.constant dense<0xFF800000> : vector<4x128xf32>
    %14 = vector.multi_reduction <maximumf>, %13, %cst_10 [1] : vector<4x8x128xf32> to vector<4x128xf32>
    %cst_11 = arith.constant 0.000000e+00 : f32
    %15 = vector.broadcast %cst_11 : f32 to vector<4x128xf32>
    %16 = arith.maximumf %14, %15 : vector<4x128xf32>
    %cst_12 = arith.constant dense<0.000000e+00> : vector<4x128xf32>
    %17 = tpu.matmul %16, %11, %cst_12 {dimension_numbers = #tpu.dot_dimension_numbers<[1], [0], [0], [1], [0, 0, 1, 1], [], []>} : vector<4x128xf32>, vector<128x128xf32>, vector<4x128xf32> -> vector<4x128xf32>
    %18 = vector.broadcast %12 : vector<1x128xf32> to vector<4x128xf32>
    %19 = arith.addf %17, %18 : vector<4x128xf32>
    %cst_13 = arith.constant 0.000000e+00 : f32
    %20 = vector.broadcast %cst_13 : f32 to vector<32x128xf32>
    %21 = arith.maximumf %9, %20 : vector<32x128xf32>
    %cst_14 = arith.constant dense<0.000000e+00> : vector<32x128xf32>
    %22 = tpu.matmul %21, %10, %cst_14 {dimension_numbers = #tpu.dot_dimension_numbers<[1], [0], [0], [1], [0, 0, 1, 1], [], []>} : vector<32x128xf32>, vector<128x128xf32>, vector<32x128xf32> -> vector<32x128xf32>
    %23 = vector.shape_cast %22 : vector<32x128xf32> to vector<4x8x128xf32>
    %24 = vector.shape_cast %19 : vector<4x128xf32> to vector<4x1x128xf32>
    %25 = vector.broadcast %24 : vector<4x1x128xf32> to vector<4x8x128xf32>
    %26 = arith.addf %23, %25 : vector<4x8x128xf32>
    %27 = vector.shape_cast %26 : vector<4x8x128xf32> to vector<32x128xf32>
    %c408 = arith.constant 408 : index
    %c0_15 = arith.constant 0 : index
    %28 = vector.load %arg2[%c408, %c0_15] : memref<1072x128xf32, #tpu.memory_space<vmem>>, vector<128x128xf32>
    %c536 = arith.constant 536 : index
    %c0_16 = arith.constant 0 : index
    %29 = vector.load %arg2[%c536, %c0_16] : memref<1072x128xf32, #tpu.memory_space<vmem>>, vector<128x128xf32>
    %c664 = arith.constant 664 : index
    %c0_17 = arith.constant 0 : index
    %30 = vector.load %arg2[%c664, %c0_17] : memref<1072x128xf32, #tpu.memory_space<vmem>>, vector<1x128xf32>
    %31 = vector.shape_cast %27 : vector<32x128xf32> to vector<4x8x128xf32>
    %cst_18 = arith.constant dense<0xFF800000> : vector<4x128xf32>
    %32 = vector.multi_reduction <maximumf>, %31, %cst_18 [1] : vector<4x8x128xf32> to vector<4x128xf32>
    %cst_19 = arith.constant 0.000000e+00 : f32
    %33 = vector.broadcast %cst_19 : f32 to vector<4x128xf32>
    %34 = arith.maximumf %32, %33 : vector<4x128xf32>
    %cst_20 = arith.constant dense<0.000000e+00> : vector<4x128xf32>
    %35 = tpu.matmul %34, %29, %cst_20 {dimension_numbers = #tpu.dot_dimension_numbers<[1], [0], [0], [1], [0, 0, 1, 1], [], []>} : vector<4x128xf32>, vector<128x128xf32>, vector<4x128xf32> -> vector<4x128xf32>
    %36 = vector.broadcast %30 : vector<1x128xf32> to vector<4x128xf32>
    %37 = arith.addf %35, %36 : vector<4x128xf32>
    %cst_21 = arith.constant 0.000000e+00 : f32
    %38 = vector.broadcast %cst_21 : f32 to vector<32x128xf32>
    %39 = arith.maximumf %27, %38 : vector<32x128xf32>
    %cst_22 = arith.constant dense<0.000000e+00> : vector<32x128xf32>
    %40 = tpu.matmul %39, %28, %cst_22 {dimension_numbers = #tpu.dot_dimension_numbers<[1], [0], [0], [1], [0, 0, 1, 1], [], []>} : vector<32x128xf32>, vector<128x128xf32>, vector<32x128xf32> -> vector<32x128xf32>
    %41 = vector.shape_cast %40 : vector<32x128xf32> to vector<4x8x128xf32>
    %42 = vector.shape_cast %37 : vector<4x128xf32> to vector<4x1x128xf32>
    %43 = vector.broadcast %42 : vector<4x1x128xf32> to vector<4x8x128xf32>
    %44 = arith.addf %41, %43 : vector<4x8x128xf32>
    %45 = vector.shape_cast %44 : vector<4x8x128xf32> to vector<32x128xf32>
    %c672 = arith.constant 672 : index
    %c0_23 = arith.constant 0 : index
    %46 = vector.load %arg2[%c672, %c0_23] : memref<1072x128xf32, #tpu.memory_space<vmem>>, vector<128x128xf32>
    %c800 = arith.constant 800 : index
    %c0_24 = arith.constant 0 : index
    %47 = vector.load %arg2[%c800, %c0_24] : memref<1072x128xf32, #tpu.memory_space<vmem>>, vector<128x128xf32>
    %c928 = arith.constant 928 : index
    %c0_25 = arith.constant 0 : index
    %48 = vector.load %arg2[%c928, %c0_25] : memref<1072x128xf32, #tpu.memory_space<vmem>>, vector<1x128xf32>
    %49 = vector.shape_cast %45 : vector<32x128xf32> to vector<4x8x128xf32>
    %cst_26 = arith.constant dense<0xFF800000> : vector<4x128xf32>
    %50 = vector.multi_reduction <maximumf>, %49, %cst_26 [1] : vector<4x8x128xf32> to vector<4x128xf32>
    %cst_27 = arith.constant 0.000000e+00 : f32
    %51 = vector.broadcast %cst_27 : f32 to vector<4x128xf32>
    %52 = arith.maximumf %50, %51 : vector<4x128xf32>
    %cst_28 = arith.constant dense<0.000000e+00> : vector<4x128xf32>
    %53 = tpu.matmul %52, %47, %cst_28 {dimension_numbers = #tpu.dot_dimension_numbers<[1], [0], [0], [1], [0, 0, 1, 1], [], []>} : vector<4x128xf32>, vector<128x128xf32>, vector<4x128xf32> -> vector<4x128xf32>
    %54 = vector.broadcast %48 : vector<1x128xf32> to vector<4x128xf32>
    %55 = arith.addf %53, %54 : vector<4x128xf32>
    %cst_29 = arith.constant 0.000000e+00 : f32
    %56 = vector.broadcast %cst_29 : f32 to vector<32x128xf32>
    %57 = arith.maximumf %45, %56 : vector<32x128xf32>
    %cst_30 = arith.constant dense<0.000000e+00> : vector<32x128xf32>
    %58 = tpu.matmul %57, %46, %cst_30 {dimension_numbers = #tpu.dot_dimension_numbers<[1], [0], [0], [1], [0, 0, 1, 1], [], []>} : vector<32x128xf32>, vector<128x128xf32>, vector<32x128xf32> -> vector<32x128xf32>
    %59 = vector.shape_cast %58 : vector<32x128xf32> to vector<4x8x128xf32>
    %60 = vector.shape_cast %55 : vector<4x128xf32> to vector<4x1x128xf32>
    %61 = vector.broadcast %60 : vector<4x1x128xf32> to vector<4x8x128xf32>
    %62 = arith.addf %59, %61 : vector<4x8x128xf32>
    %63 = vector.shape_cast %62 : vector<4x8x128xf32> to vector<32x128xf32>
    %c936 = arith.constant 936 : index
    %c0_31 = arith.constant 0 : index
    %64 = vector.load %arg2[%c936, %c0_31] : memref<1072x128xf32, #tpu.memory_space<vmem>>, vector<128x128xf32>
    %c1064 = arith.constant 1064 : index
    %c0_32 = arith.constant 0 : index
    %65 = vector.load %arg2[%c1064, %c0_32] : memref<1072x128xf32, #tpu.memory_space<vmem>>, vector<1x128xf32>
    %66 = vector.shape_cast %63 : vector<32x128xf32> to vector<4x8x128xf32>
    %cst_33 = arith.constant dense<0xFF800000> : vector<4x128xf32>
    %67 = vector.multi_reduction <maximumf>, %66, %cst_33 [1] : vector<4x8x128xf32> to vector<4x128xf32>
    %cst_34 = arith.constant dense<0.000000e+00> : vector<4x128xf32>
    %68 = tpu.matmul %67, %64, %cst_34 {dimension_numbers = #tpu.dot_dimension_numbers<[1], [0], [0], [1], [0, 0, 1, 1], [], []>} : vector<4x128xf32>, vector<128x128xf32>, vector<4x128xf32> -> vector<4x128xf32>
    %69 = vector.broadcast %65 : vector<1x128xf32> to vector<4x128xf32>
    %70 = arith.addf %68, %69 : vector<4x128xf32>
    %c0_35 = arith.constant 0 : index
    %c0_36 = arith.constant 0 : index
    %71 = vector.load %arg3[%c0_35, %c0_36] : memref<4x128xf32, #tpu.memory_space<vmem>>, vector<4x128xf32>
    tpu.vector_store %arg3[%c0_35, %c0_36], %70 {strides = array<i32>} : memref<4x128xf32, #tpu.memory_space<vmem>>, vector<4x128xf32>,
    return
  }
  func.func @transform_0(%arg0: i32) -> (i32, i32) {
    %c0_i32 = arith.constant 0 : i32
    %c0_i32_0 = arith.constant 0 : i32
    return %arg0, %c0_i32 : i32, i32
  }
  func.func @transform_1(%arg0: i32) -> (i32, i32) {
    %c0_i32 = arith.constant 0 : i32
    %c0_i32_0 = arith.constant 0 : i32
    %c0_i32_1 = arith.constant 0 : i32
    return %c0_i32, %c0_i32_0 : i32, i32
  }
  func.func @transform_2(%arg0: i32) -> (i32, i32) {
    %c0_i32 = arith.constant 0 : i32
    %c0_i32_0 = arith.constant 0 : i32
    return %arg0, %c0_i32 : i32, i32
  }
}

</mosaic_0001>

<bundles_post_ra>
// kernel: tpu_custom_call.1
= control target key start
LH: loop header
LB: loop body
LE: loop exit
PB: predicated region body
PF: predicated region fallthrough
CT: control target
= control target key end

     0   :  { %7 = vsyncpa [#allocation3], 0  ;;  %s2106_s0 = inlined_call_operand.vmem [shape: f32[32,8], index: 0, kind: input, shape index: {}]   ;;  %s2107_s1 = inlined_call_operand.hbm [shape: f32[1072,128], index: 1, kind: input, shape index: {}]   ;;  %s2108_s2 = inlined_call_operand.hbm [shape: f32[4,128], index: 2, kind: output, shape index: {}]  }
   0x1   :  { %8 = vsyncpa [#allocation4], 0  ;;  %s1966_s9 = smov [#allocation2]   ;;  %s1918_s13 = scalar_lea.hbm %s2107_s1, 17152 }
   0x2   :  { %s16_s10 = sshll.u32 %s1966_s9, 4  ;;  %p1919_p0 = scmp.ne.s32.totalorder %s2107_s1, %s1918_s13  ;;  %s17_s10 = int_to_ptr.vmem [resolvable:$true] %s16_s10 }
   0x3   :  { %p1922_p1 = scmp.lt.u32.totalorder %s1918_s13, %s2107_s1 }
   0x5   :  { %p1924_p2 = pnand %p1922_p1, %p1919_p0 }
   0x7   :  { %1927 = shalt.err (!%p1924_p2)
}
   0x8   :  { %s1928_s18 = scalar_lea.vmem %s17_s10, 17152  ;;  %p1933_p4 = scmp.lt.s32.totalorder %s17_s10, %s17_s10 }
   0x9   :  { %p1929_p3 = scmp.ne.s32.totalorder %s17_s10, %s1928_s18  ;;  %p1934_p5 = scmp.lt.s32.totalorder %s1928_s18, %s1928_s18 }
   0xb   :  { %p1935_p6 = por %p1934_p5, %p1933_p4 }
   0xd   :  { %p1936_p7 = pnand %p1935_p6, %p1929_p3 }
   0xf   :  { %1939 = shalt.err (!%p1936_p7)
}
  0x10   :  { %s1967_s19 = smov 128   ;;  %s1968_s20 = smov 8  }
  0x11   :  { %22 = dma.hbm_to_vmem [thread:$0]  %s2107_s1, 17152, %s17_s10, [#allocation3], %s1967_s19, %s1967_s19, %s1968_s20  }
  0x12   :  { %1962 = dma.done.wait [#allocation3], 17152  }
  0x13   :  { %1963 = vsyncadd [#allocation3], 4294950144  ;;  %vm31_vm0 = vcmask 64512   ;;  %v30_v0 = vld [vmem:[#allocation2] sm:$0xff]  ;;  %v27_v2 = vld [vmem:[%s2106_s0 + $0x8] sm:$0xff]  ;;  %v1969_v32 = vmov 0.0|0.0  }
  0x14   :  { %v26_v1 = vld [vmem:[%s2106_s0] sm:$0xff]  ;;  %1386 = vmatprep.subr.mxu0 %v30_v0  ;;  %v28_v3 = vld [vmem:[%s2106_s0 + $0x10] sm:$0xff]  ;;  %v129_v4 = vld [vmem:[#allocation2 + $0x8] sm:$0xff]  ;;  %vm1970_vm1 = vmmov 0   ;;  %vm308_vm2 = vcmask 1041409   ;;  %vm310_vm3 = vcmask 1042434  }
  0x15   :  { %1388 = vmatprep.mubr.msk.f32.mxu0 %vm31_vm0, %v26_v1  ;;  %1387 = vmatpush3.msra.mxu0 %v30_v0  ;;  %v130_v5 = vld [vmem:[#allocation2 + $0x10] sm:$0xff]  ;;  %v131_v6 = vld [vmem:[#allocation2 + $0x18] sm:$0xff]  ;;  %v132_v7 = vld [vmem:[#allocation2 + $0x20] sm:$0xff]  ;;  %vm312_vm4 = vcmask 1043459  }
  0x16   :  { %1389 = vmatmul.mubr.msk.f32.vlgmr.msra.gmra.mrb[0].mxu0 %vm31_vm0, %v27_v2  ;;  %v1686_v8 = vpack.c.bf16 %v130_v5, %v129_v4  ;;  %v1690_v9 = vpack.c.bf16 %v132_v7, %v131_v6  ;;  %v29_v10 = vld [vmem:[%s2106_s0 + $0x18] sm:$0xff]  ;;  %v133_v11 = vld [vmem:[#allocation2 + $0x28] sm:$0xff]  ;;  %v134_v12 = vld [vmem:[#allocation2 + $0x30] sm:$0xff]  ;;  %1718 = vmatprep.subr.bf16.mxu0 %v1969_v32  ;;  %s1973_s0 = smov [#allocation5]  }
  0x17   :  { %1391 = vmatprep.mubr.msk.f32.mxu0 %vm31_vm0, %v28_v3  ;;  %v1694_v13 = vpack.c.bf16 %v134_v12, %v133_v11  ;;  %v135_v14 = vld [vmem:[#allocation2 + $0x38] sm:$0xff]  ;;  %v136_v15 = vld [vmem:[#allocation2 + $0x40] sm:$0xff]  ;;  %v137_v17 = vld [vmem:[#allocation2 + $0x48] sm:$0xff]  ;;  %s1215_s30 = sshll.u32 %s1973_s0, 4  ;;  %s1216_s30 = int_to_ptr.vmem [resolvable:$true] %s1215_s30 }
  0x18   :  { %1687 = vmatprep.subr.bf16.mxu1 %v1686_v8  ;;  %v1698_v16 = vpack.c.bf16 %v136_v15, %v135_v14  ;;  %v138_v18 = vld [vmem:[#allocation2 + $0x50] sm:$0xff]  ;;  %v139_v20 = vld [vmem:[#allocation2 + $0x58] sm:$0xff]  ;;  %v140_v21 = vld [vmem:[#allocation2 + $0x60] sm:$0xff]  ;;  %s1940_s3 = scalar_lea.vmem %s1216_s30, 64  ;;  %p1945_p9 = scmp.lt.s32.totalorder %s1216_s30, %s1216_s30 }
  0x19   :  { %1689 = vmatpush3.bf16.msra.mxu1 %v1686_v8  ;;  %v1702_v19 = vpack.c.bf16 %v138_v18, %v137_v17  ;;  %v1706_v22 = vpack.c.bf16 %v140_v21, %v139_v20  ;;  %v141_v23 = vld [vmem:[#allocation2 + $0x68] sm:$0xff]  ;;  %v142_v24 = vld [vmem:[#allocation2 + $0x70] sm:$0xff]  ;;  %v143_v26 = vld [vmem:[#allocation2 + $0x78] sm:$0xff]  ;;  %p1941_p8 = scmp.ne.s32.totalorder %s1216_s30, %s1940_s3  ;;  %p1946_p10 = scmp.lt.s32.totalorder %s1940_s3, %s1940_s3 }
  0x1a   :  { %1392 = vmatmul.mubr.msk.f32.gmra.mrb[2].mxu0 %vm31_vm0, %v29_v10  ;;  %1691 = vmatprep.subr.bf16.mxu1 %v1690_v9  ;;  %v1710_v25 = vpack.c.bf16 %v142_v24, %v141_v23  ;;  %v144_v27 = vld [vmem:[#allocation2 + $0x80] sm:$0xff]  ;;  %v239_v29 = vld [vmem:[#allocation2 + $0x90] sm:$0xff]  ;;  %v240_v30 = vld [vmem:[#allocation2 + $0x98] sm:$0xff] }
  0x1b   :  { %v1714_v28 = vpack.c.bf16 %v144_v27, %v143_v26  ;;  %v1742_v31 = vpack.c.bf16 %v240_v30, %v239_v29  ;;  %v255_v33 = vld [vmem:[#allocation2 + $0x110] sm:$0xff]  ;;  %v256_v34 = vld [vmem:[#allocation2 + $0x118] sm:$0xff]  ;;  %v257_v36 = vld [vmem:[#allocation2 + $0x120] sm:$0xff]  ;;  %p1947_p11 = por %p1946_p10, %p1945_p9 }
  0x1c   :  { %v1719_v35 = vpack.c.bf16 %v256_v34, %v255_v33  ;;  %v258_v37 = vld [vmem:[#allocation2 + $0x128] sm:$0xff]  ;;  %v241_v40 = vld [vmem:[#allocation2 + $0xa0] sm:$0xff]  ;;  %v243_v47 = vld [vmem:[#allocation2 + $0xb0] sm:$0xff] }
  0x1d   :  { %1693 = vmatpush3.bf16.msra.mxu1 %v1690_v9  ;;  %v1722_v38 = vpack.c.bf16 %v258_v37, %v257_v36  ;;  %v242_v41 = vld [vmem:[#allocation2 + $0xa8] sm:$0xff]  ;;  %v244_v48 = vld [vmem:[#allocation2 + $0xb8] sm:$0xff]  ;;  %v245_v53 = vld [vmem:[#allocation2 + $0xc0] sm:$0xff]  ;;  %p1948_p12 = pnand %p1947_p11, %p1941_p8 }
  0x1e   :  { %1695 = vmatprep.subr.bf16.mxu1 %v1694_v13  ;;  %1720 = vmatpush3.bf16.msra.mxu0 %v1719_v35  ;;  %v1746_v45 = vpack.c.bf16 %v242_v41, %v241_v40  ;;  %v1750_v52 = vpack.c.bf16 %v244_v48, %v243_v47  ;;  %v246_v54 = vld [vmem:[#allocation2 + $0xc8] sm:$0xff]  ;;  %v247_v56 = vld [vmem:[#allocation2 + $0xd0] sm:$0xff]  ;;  %v248_v57 = vld [vmem:[#allocation2 + $0xd8] sm:$0xff] }
  0x1f   :  { %1721 = vmatprep.subr.bf16.mxu0 %v1969_v32  ;;  %v1754_v55 = vpack.c.bf16 %v246_v54, %v245_v53  ;;  %v1758_v58 = vpack.c.bf16 %v248_v57, %v247_v56  ;;  %v249_v59 = vld [vmem:[#allocation2 + $0xe0] sm:$0xff]  ;;  %v250_v60 = vld [vmem:[#allocation2 + $0xe8] sm:$0xff]  ;;  %v251_v62 = vld [vmem:[#allocation2 + $0xf0] sm:$0xff] }
  0x20   :  { %v1762_v61 = vpack.c.bf16 %v250_v60, %v249_v59  ;;  %v252_v63 = vld [vmem:[#allocation2 + $0xf8] sm:$0xff]  ;;  %v259_v1 = vld [vmem:[#allocation2 + $0x130] sm:$0xff]  ;;  %v253_v4 = vld [vmem:[#allocation2 + $0x100] sm:$0xff] }
  0x21   :  { %1697 = vmatpush3.bf16.msra.mxu1 %v1694_v13  ;;  %v1766_v0 = vpack.c.bf16 %v252_v63, %v251_v62  ;;  %v260_v2 = vld [vmem:[#allocation2 + $0x138] sm:$0xff]  ;;  %v254_v5 = vld [vmem:[#allocation2 + $0x108] sm:$0xff]  ;;  %v261_v7 = vld [vmem:[#allocation2 + $0x140] sm:$0xff] }
  0x22   :  { %1699 = vmatprep.subr.bf16.mxu1 %v1698_v16  ;;  %1723 = vmatpush3.bf16.msra.mxu0 %v1722_v38  ;;  %v1725_v3 = vpack.c.bf16 %v260_v2, %v259_v1  ;;  %v1770_v6 = vpack.c.bf16 %v254_v5, %v253_v4  ;;  %v262_v8 = vld [vmem:[#allocation2 + $0x148] sm:$0xff]  ;;  %v263_v10 = vld [vmem:[#allocation2 + $0x150] sm:$0xff]  ;;  %v264_v11 = vld [vmem:[#allocation2 + $0x158] sm:$0xff] }
  0x23   :  { %1724 = vmatprep.subr.bf16.mxu0 %v1969_v32  ;;  %v1728_v9 = vpack.c.bf16 %v262_v8, %v261_v7  ;;  %v1731_v12 = vpack.c.bf16 %v264_v11, %v263_v10  ;;  %v265_v13 = vld [vmem:[#allocation2 + $0x160] sm:$0xff]  ;;  %v266_v14 = vld [vmem:[#allocation2 + $0x168] sm:$0xff]  ;;  %v268_v17 = vld [vmem:[#allocation2 + $0x178] sm:$0xff] }
  0x24   :  { %v1734_v15 = vpack.c.bf16 %v266_v14, %v265_v13  ;;  %v270_v20 = vld [vmem:[#allocation2 + $0x188] sm:$0xff]  ;;  %v523_v4 = vld [vmem:[#allocation2 + $0x198] sm:$0xff]  ;;  %v524_v5 = vld [vmem:[#allocation2 + $0x1a0] sm:$0xff] }
  0x25   :  { %1701 = vmatpush3.bf16.msra.mxu1 %v1698_v16  ;;  %v267_v16 = vld [vmem:[#allocation2 + $0x170] sm:$0xff]  ;;  %v1228_v23 = vld [vmem:[#allocation2 + $0x88] ss:$0 sm:$0xff]  ;;  %v527_v10 = vld [vmem:[#allocation2 + $0x1b8] sm:$0xff] }
  0x26   :  { %1703 = vmatprep.subr.bf16.mxu1 %v1702_v19  ;;  %1726 = vmatpush3.bf16.msra.mxu0 %v1725_v3  ;;  %v1737_v18 = vpack.c.bf16 %v268_v17, %v267_v16  ;;  %v525_v7 = vld [vmem:[#allocation2 + $0x1a8] sm:$0xff]  ;;  %v526_v8 = vld [vmem:[#allocation2 + $0x1b0] sm:$0xff]  ;;  %v528_v11 = vld [vmem:[#allocation2 + $0x1c0] sm:$0xff] }
  0x27   :  { %1727 = vmatprep.subr.bf16.mxu0 %v1969_v32  ;;  %v1806_v13 = vpack.c.bf16 %v528_v11, %v527_v10  ;;  %v530_v14 = vld [vmem:[#allocation2 + $0x1d0] sm:$0xff]  ;;  %v540_v16 = vld [vmem:[#allocation2 + $0x220] sm:$0xff] }
  0x29   :  { %1705 = vmatpush3.bf16.msra.mxu1 %v1702_v19  ;;  %v269_v19 = vld [vmem:[#allocation2 + $0x180] sm:$0xff] }
  0x2a   :  { %1707 = vmatprep.subr.bf16.mxu1 %v1706_v22  ;;  %1729 = vmatpush3.bf16.msra.mxu0 %v1728_v9  ;;  %v1740_v21 = vpack.c.bf16 %v270_v20, %v269_v19  ;;  %v1802_v9 = vpack.c.bf16 %v526_v8, %v525_v7  ;;  %v531_v19 = vld [vmem:[#allocation2 + $0x1d8] sm:$0xff]  ;;  %v532_v20 = vld [vmem:[#allocation2 + $0x1e0] sm:$0xff] }
  0x2b   :  { %1730 = vmatprep.subr.bf16.mxu0 %v1969_v32 }
  0x2d   :  { %1709 = vmatpush3.bf16.msra.mxu1 %v1706_v22  ;;  %v1971_v22 = vmov 0.0  }
  0x2e   :  { %1711 = vmatprep.subr.bf16.mxu1 %v1710_v25  ;;  %1732 = vmatpush3.bf16.msra.mxu0 %v1731_v12  ;;  %v529_v12 = vld [vmem:[#allocation2 + $0x1c8] sm:$0xff] }
  0x2f   :  { %1733 = vmatprep.subr.bf16.mxu0 %v1969_v32  ;;  %1464 = vmatprep.mubr.msk.f32.mxu0 %vm1970_vm1, %v1971_v22  ;;  %v1810_v17 = vpack.c.bf16 %v530_v14, %v529_v12 }
  0x31   :  { %1713 = vmatpush3.bf16.msra.mxu1 %v1710_v25 }
  0x32   :  { %1715 = vmatprep.subr.bf16.mxu1 %v1714_v28  ;;  %1735 = vmatpush3.bf16.msra.mxu0 %v1734_v15  ;;  %v539_v15 = vld [vmem:[#allocation2 + $0x218] sm:$0xff] }
  0x33   :  { %1736 = vmatprep.subr.bf16.mxu0 %v1969_v32 }
  0x35   :  { %1717 = vmatpush3.bf16.msra.mxu1 %v1714_v28 }
  0x36   :  { %1743 = vmatprep.subr.bf16.mxu1 %v1742_v31  ;;  %1738 = vmatpush3.bf16.msra.mxu0 %v1737_v18  ;;  %v1775_v18 = vpack.c.bf16 %v540_v16, %v539_v15 }
  0x37   :  { %1739 = vmatprep.subr.bf16.mxu0 %v1969_v32 }
  0x3a   :  { %1741 = vmatpush3.bf16.msra.mxu0 %v1740_v21  ;;  %v1814_v21 = vpack.c.bf16 %v532_v20, %v531_v19 }
  0x3b   :  { %1774 = vmatprep.subr.bf16.mxu0 %v1969_v32 }
  0xe9   :  { %v1390_v39 = vpop.f32.mrb[0].mxu0 }
  0xea   :  { %v110_v42 = vpop.f32.mrb[1].mxu0  ;;  %v147_v44 = vmax.f32 %v1390_v39, 0.0 }
  0xeb   :  { %v146_v43 = vmax.f32 %v110_v42, 0.0 }
  0xed   :  { %v1393_v46 = vpop.f32.mrb[2].mxu0  ;;  %1426 = vmatprep.mubr.f32.mxu1 %v146_v43 }
  0xee   :  { %v120_v49 = vpop.f32.mrb[3].mxu0  ;;  %1427 = vmatmul.mubr.f32.vlgmr.msra.gmra.mrb[0].mxu1 %v147_v44  ;;  %v149_v51 = vmax.f32 %v1393_v46, 0.0 }
  0xef   :  { %v148_v50 = vmax.f32 %v120_v49, 0.0  ;;  %1745 = vmatpush3.bf16.msra.mxu1 %v1742_v31 }
  0xf0   :  { %1747 = vmatprep.subr.bf16.mxu1 %v1746_v45 }
  0xf1   :  { %1429 = vmatprep.mubr.f32.mxu1 %v148_v50 }
  0xf2   :  { %1430 = vmatmul.mubr.f32.gmra.mrb[2].mxu1 %v149_v51 }
  0xf3   :  { %1749 = vmatpush3.bf16.msra.mxu1 %v1746_v45 }
  0xf4   :  { %1751 = vmatprep.subr.bf16.mxu1 %v1750_v52 }
  0xf7   :  { %1753 = vmatpush3.bf16.msra.mxu1 %v1750_v52 }
  0xf8   :  { %1755 = vmatprep.subr.bf16.mxu1 %v1754_v55 }
  0xfb   :  { %1757 = vmatpush3.bf16.msra.mxu1 %v1754_v55 }
  0xfc   :  { %1759 = vmatprep.subr.bf16.mxu1 %v1758_v58 }
  0xff   :  { %1761 = vmatpush3.bf16.msra.mxu1 %v1758_v58 }
 0x100   :  { %1763 = vmatprep.subr.bf16.mxu1 %v1762_v61 }
 0x103   :  { %1765 = vmatpush3.bf16.msra.mxu1 %v1762_v61 }
 0x104   :  { %1767 = vmatprep.subr.bf16.mxu1 %v1766_v0 }
 0x107   :  { %1769 = vmatpush3.bf16.msra.mxu1 %v1766_v0 }
 0x108   :  { %1771 = vmatprep.subr.bf16.mxu1 %v1770_v6 }
 0x10b   :  { %1773 = vmatpush3.bf16.msra.mxu1 %v1770_v6  ;;  %v1798_v6 = vpack.c.bf16 %v524_v5, %v523_v4 }
 0x10d   :  { %1799 = vmatprep.subr.bf16.mxu1 %v1798_v6 }
 0x1c1   :  { %v1428_v24 = vpop.f32.mrb[0].mxu1 }
 0x1c2   :  { %v226_v25 = vadd.f32 %v1428_v24, %v1228_v23  ;;  %v220_v26 = vpop.f32.mrb[1].mxu1  ;;  %v542_v24 = vld [vmem:[#allocation2 + $0x230] sm:$0xff] }
 0x1c3   :  { %v221_v27 = vadd.f32 %v1228_v23, %v220_v26 }
 0x1c4   :  { %v278_v28 = vrot.slane %v226_v25, 4  ;;  %v386_v34 = vmax.f32 %v226_v25, 0.0 }
 0x1c5   :  { %v272_v29 = vrot.slane %v221_v27, 4  ;;  %v1431_v30 = vpop.f32.mrb[2].mxu1  ;;  %v385_v31 = vmax.f32 %v221_v27, 0.0 }
 0x1c6   :  { %v279_v33 = vmax.f32 %v226_v25, %v278_v28  ;;  %v236_v35 = vadd.f32 %v1431_v30, %v1228_v23  ;;  %v230_v36 = vpop.f32.mrb[3].mxu1  ;;  %v533_v25 = vld [vmem:[#allocation2 + $0x1e8] sm:$0xff]  ;;  %v544_v30 = vld [vmem:[#allocation2 + $0x240] sm:$0xff] }
 0x1c7   :  { %v273_v37 = vmax.f32 %v221_v27, %v272_v29  ;;  %v231_v38 = vadd.f32 %v1228_v23, %v230_v36  ;;  %1499 = vmatprep.mubr.f32.mxu1 %v385_v31  ;;  %v541_v23 = vld [vmem:[#allocation2 + $0x228] sm:$0xff]  ;;  %v534_v27 = vld [vmem:[#allocation2 + $0x1f0] sm:$0xff]  ;;  %v543_v29 = vld [vmem:[#allocation2 + $0x238] sm:$0xff] }
 0x1c8   :  { %v280_v39 = vrot.slane %v279_v33, 2  ;;  %v290_v40 = vrot.slane %v236_v35, 4  ;;  %1500 = vmatmul.mubr.f32.vlgmr.msra.gmra.mrb[4].mxu1 %v386_v34  ;;  %v388_v46 = vmax.f32 %v236_v35, 0.0  ;;  %v1778_v26 = vpack.c.bf16 %v542_v24, %v541_v23  ;;  %v535_v31 = vld [vmem:[#allocation2 + $0x1f8] sm:$0xff]  ;;  %v536_v34 = vld [vmem:[#allocation2 + $0x200] sm:$0xff]  ;;  %v545_v36 = vld [vmem:[#allocation2 + $0x248] sm:$0xff] }
 0x1c9   :  { %v274_v41 = vrot.slane %v273_v37, 2  ;;  %v284_v42 = vrot.slane %v231_v38, 4  ;;  %v387_v43 = vmax.f32 %v231_v38, 0.0  ;;  %1801 = vmatpush3.bf16.msra.mxu1 %v1798_v6  ;;  %v1818_v28 = vpack.c.bf16 %v534_v27, %v533_v25 }
 0x1ca   :  { %v281_v44 = vmax.f32 %v279_v33, %v280_v39  ;;  %v291_v45 = vmax.f32 %v236_v35, %v290_v40  ;;  %1803 = vmatprep.subr.bf16.mxu1 %v1802_v9  ;;  %v1781_v33 = vpack.c.bf16 %v544_v30, %v543_v29  ;;  %v1822_v35 = vpack.c.bf16 %v536_v34, %v535_v31  ;;  %v538_v40 = vld [vmem:[#allocation2 + $0x210] sm:$0xff] }
 0x1cb   :  { %v275_v47 = vmax.f32 %v273_v37, %v274_v41  ;;  %v285_v48 = vmax.f32 %v231_v38, %v284_v42  ;;  %1502 = vmatprep.mubr.f32.mxu1 %v387_v43  ;;  %v546_v37 = vld [vmem:[#allocation2 + $0x250] sm:$0xff]  ;;  %v537_v38 = vld [vmem:[#allocation2 + $0x208] sm:$0xff]  ;;  %v547_v42 = vld [vmem:[#allocation2 + $0x258] sm:$0xff] }
 0x1cc   :  { %v282_v49 = vrot.slane %v281_v44, 1  ;;  %v292_v50 = vrot.slane %v291_v45, 2  ;;  %1503 = vmatmul.mubr.f32.gmra.mrb[6].mxu1 %v388_v46  ;;  %v1784_v39 = vpack.c.bf16 %v546_v37, %v545_v36  ;;  %v1826_v41 = vpack.c.bf16 %v538_v40, %v537_v38  ;;  %v548_v43 = vld [vmem:[#allocation2 + $0x260] sm:$0xff]  ;;  %v550_v46 = vld [vmem:[#allocation2 + $0x270] sm:$0xff] }
 0x1cd   :  { %v276_v51 = vrot.slane %v275_v47, 1  ;;  %v286_v52 = vrot.slane %v285_v48, 2  ;;  %1805 = vmatpush3.bf16.msra.mxu1 %v1802_v9 }
 0x1ce   :  { %v283_v53 = vmax.f32 %v281_v44, %v282_v49  ;;  %v293_v54 = vmax.f32 %v291_v45, %v292_v50  ;;  %1807 = vmatprep.subr.bf16.mxu1 %v1806_v13  ;;  %v1787_v44 = vpack.c.bf16 %v548_v43, %v547_v42  ;;  %v549_v45 = vld [vmem:[#allocation2 + $0x268] sm:$0xff]  ;;  %v552_v49 = vld [vmem:[#allocation2 + $0x280] sm:$0xff] }
 0x1cf   :  { %v277_v55 = vmax.f32 %v275_v47, %v276_v51  ;;  %v287_v56 = vmax.f32 %v285_v48, %v286_v52  ;;  %v1790_v47 = vpack.c.bf16 %v550_v46, %v549_v45  ;;  %v551_v48 = vld [vmem:[#allocation2 + $0x278] sm:$0xff]  ;;  %v553_v51 = vld [vmem:[#allocation2 + $0x288] sm:$0xff]  ;;  %v554_v52 = vld [vmem:[#allocation2 + $0x290] sm:$0xff] }
 0x1d0   :  { %v297_v57 = vmax.f32 %v283_v53, 0.0  ;;  %v294_v58 = vrot.slane %v293_v54, 1  ;;  %v1793_v50 = vpack.c.bf16 %v552_v49, %v551_v48  ;;  %v1796_v53 = vpack.c.bf16 %v554_v52, %v553_v51 }
 0x1d1   :  { %v296_v59 = vmax.f32 %v277_v55, 0.0  ;;  %v288_v60 = vrot.slane %v287_v56, 1  ;;  %1809 = vmatpush3.bf16.msra.mxu1 %v1806_v13  ;;  %v805_v55 = vld [vmem:[#allocation2 + $0x2a8] sm:$0xff] }
 0x1d2   :  { %v295_v61 = vmax.f32 %v293_v54, %v294_v58  ;;  %1811 = vmatprep.subr.bf16.mxu1 %v1810_v17  ;;  %v804_v54 = vld [vmem:[#allocation2 + $0x2a0] sm:$0xff] }
 0x1d3   :  { %v289_v62 = vmax.f32 %v287_v56, %v288_v60  ;;  %v309_v63 = vsel %vm308_vm2, %v297_v57, %v296_v59  ;;  %v1854_v56 = vpack.c.bf16 %v805_v55, %v804_v54 }
 0x1d4   :  { %v299_v1 = vmax.f32 %v295_v61, 0.0  ;;  %v1972_v61 = vmov 1966171168  }
 0x1d5   :  { %v298_v0 = vmax.f32 %v289_v62, 0.0  ;;  %1813 = vmatpush3.bf16.msra.mxu1 %v1810_v17  ;;  %v476_v62 = vunpack.c.l.s4 %v1972_v61 }
 0x1d6   :  { %1815 = vmatprep.subr.bf16.mxu1 %v1814_v21 }
 0x1d7   :  { %v311_v2 = vsel %vm310_vm3, %v298_v0, %v309_v63  ;;  %v478_v63 = vlaneseq  ;;  %v477_v0 = vunpack.c.0.s8 %v476_v62  ;;  %v808_v62 = vld [vmem:[#allocation2 + $0x2c0] sm:$0xff] }
 0x1d8   :  { %v313_v3 = vsel %vm312_vm4, %v299_v1, %v311_v2  ;;  %v1229_v2 = vld [vmem:[#allocation2 + $0x190] ss:$0 sm:$0xff] }
 0x1d9   :  { %1465 = vmatmul.mubr.f32.vlgmr.msra.gmra.mrb[4].mxu0 %v313_v3  ;;  %1817 = vmatpush3.bf16.msra.mxu1 %v1814_v21  ;;  %v479_v1 = vshrl.u32 %v478_v63, 7  ;;  %v809_v63 = vld [vmem:[#allocation2 + $0x2c8] sm:$0xff] }
 0x1da   :  { %1537 = vmatprep.mubr.msk.f32.mxu0 %vm1970_vm1, %v1971_v22  ;;  %1776 = vmatpush3.bf16.msra.mxu0 %v1775_v18 }
 0x1db   :  { %1777 = vmatprep.subr.bf16.mxu0 %v1969_v32  ;;  %1819 = vmatprep.subr.bf16.mxu1 %v1818_v28  ;;  %v2041_v3 = vsub.s32 %v477_v0, %v479_v1  ;;  %v2044_v8 = vsub.s32 0, %v479_v1  ;;  %v1862_v0 = vpack.c.bf16 %v809_v63, %v808_v62  ;;  %v810_v1 = vld [vmem:[#allocation2 + $0x2d0] sm:$0xff] }
 0x1dd   :  { %1821 = vmatpush3.bf16.msra.mxu1 %v1818_v28 }
 0x1de   :  { %1779 = vmatpush3.bf16.msra.mxu0 %v1778_v26  ;;  %1823 = vmatprep.subr.bf16.mxu1 %v1822_v35 }
 0x1df   :  { %1780 = vmatprep.subr.bf16.mxu0 %v1969_v32 }
 0x1e1   :  { %1825 = vmatpush3.bf16.msra.mxu1 %v1822_v35 }
 0x1e2   :  { %1782 = vmatpush3.bf16.msra.mxu0 %v1781_v33  ;;  %1827 = vmatprep.subr.bf16.mxu1 %v1826_v41 }
 0x1e3   :  { %1783 = vmatprep.subr.bf16.mxu0 %v1969_v32 }
 0x1e5   :  { %1829 = vmatpush3.bf16.msra.mxu1 %v1826_v41 }
 0x1e6   :  { %1785 = vmatpush3.bf16.msra.mxu0 %v1784_v39  ;;  %1855 = vmatprep.subr.bf16.mxu1 %v1854_v56 }
 0x1e7   :  { %1786 = vmatprep.subr.bf16.mxu0 %v1969_v32 }
 0x1ea   :  { %1788 = vmatpush3.bf16.msra.mxu0 %v1787_v44 }
 0x1eb   :  { %1789 = vmatprep.subr.bf16.mxu0 %v1969_v32 }
 0x1ee   :  { %1791 = vmatpush3.bf16.msra.mxu0 %v1790_v47 }
 0x1ef   :  { %1792 = vmatprep.subr.bf16.mxu0 %v1969_v32 }
 0x1f2   :  { %1794 = vmatpush3.bf16.msra.mxu0 %v1793_v50 }
 0x1f3   :  { %1795 = vmatprep.subr.bf16.mxu0 %v1969_v32 }
 0x1f6   :  { %1797 = vmatpush3.bf16.msra.mxu0 %v1796_v53 }
 0x1f7   :  { %1830 = vmatprep.subr.bf16.mxu0 %v1969_v32 }
 0x29b   :  { %v1501_v57 = vpop.f32.mrb[4].mxu1 }
 0x29c   :  { %v455_v58 = vpop.f32.mrb[5].mxu1 }
 0x29f   :  { %v1504_v59 = vpop.f32.mrb[6].mxu1 }
 0x2a0   :  { %v465_v60 = vpop.f32.mrb[7].mxu1 }
 0x2ac   :  { %v381_v4 = vpop.f32.mrb[4].mxu0 }
 0x2ad   :  { %v382_v5 = vadd.f32 %v1229_v2, %v381_v4  ;;  %v1466_v6 = vpop.f32.mrb[5].mxu0  ;;  %v811_v2 = vld [vmem:[#allocation2 + $0x2d8] sm:$0xff]  ;;  %v820_v4 = vld [vmem:[#allocation2 + $0x320] sm:$0xff] }
 0x2ae   :  { %v821_v6 = vld [vmem:[#allocation2 + $0x328] sm:$0xff] }
 0x2af   :  { %v481_v7 = vrot.slane %v382_v5, %v2041_v3  ;;  %v1866_v5 = vpack.c.bf16 %v811_v2, %v810_v1 }
 0x2b1   :  { %v482_v9 = vcombine.high %v481_v7, %v481_v7  ;;  %v489_v10 = vrot.slane %v481_v7, %v2041_v3  ;;  %v812_v7 = vld [vmem:[#allocation2 + $0x2e0] sm:$0xff] }
 0x2b3   :  { %v496_v11 = vrot.slane %v482_v9, %v2041_v3  ;;  %v497_v12 = vcombine.high %v489_v10, %v489_v10  ;;  %v502_v13 = vrot.slane %v489_v10, %v2044_v8  ;;  %v813_v9 = vld [vmem:[#allocation2 + $0x2e8] sm:$0xff]  ;;  %v1831_v10 = vpack.c.bf16 %v821_v6, %v820_v4 }
 0x2b5   :  { %v498_v14 = vcombine.high %v496_v11, %v496_v11  ;;  %v506_v15 = vrot.slane %v496_v11, %v2044_v8  ;;  %v510_v16 = vrot.slane %v497_v12, %v2044_v8  ;;  %v519_v17 = vadd.f32 %v502_v13, %v455_v58  ;;  %v822_v12 = vld [vmem:[#allocation2 + $0x330] sm:$0xff]  ;;  %v823_v13 = vld [vmem:[#allocation2 + $0x338] sm:$0xff] }
 0x2b6   :  { %v1870_v11 = vpack.c.bf16 %v813_v9, %v812_v7 }
 0x2b7   :  { %v520_v18 = vadd.f32 %v1501_v57, %v506_v15  ;;  %v556_v19 = vrot.slane %v519_v17, 4  ;;  %v666_v20 = vmax.f32 %v519_v17, 0.0  ;;  %v521_v21 = vadd.f32 %v510_v16, %v465_v60  ;;  %v807_v60 = vld [vmem:[#allocation2 + $0x2b8] sm:$0xff] }
 0x2b8   :  { %v514_v23 = vrot.slane %v498_v14, %v2044_v8  ;;  %v814_v14 = vld [vmem:[#allocation2 + $0x2f0] sm:$0xff]  ;;  %v1834_v15 = vpack.c.bf16 %v823_v13, %v822_v12  ;;  %v815_v16 = vld [vmem:[#allocation2 + $0x2f8] sm:$0xff] }
 0x2b9   :  { %v562_v24 = vrot.slane %v520_v18, 4  ;;  %v557_v25 = vmax.f32 %v519_v17, %v556_v19  ;;  %1572 = vmatprep.mubr.f32.mxu1 %v666_v20  ;;  %v667_v26 = vmax.f32 %v520_v18, 0.0  ;;  %v568_v27 = vrot.slane %v521_v21, 4  ;;  %v825_v19 = vld [vmem:[#allocation2 + $0x348] sm:$0xff]  ;;  %v816_v20 = vld [vmem:[#allocation2 + $0x300] sm:$0xff] }
 0x2ba   :  { %v668_v28 = vmax.f32 %v521_v21, 0.0  ;;  %v522_v29 = vadd.f32 %v1504_v59, %v514_v23  ;;  %v806_v59 = vld [vmem:[#allocation2 + $0x2b0] sm:$0xff]  ;;  %v1874_v17 = vpack.c.bf16 %v815_v16, %v814_v14  ;;  %v817_v23 = vld [vmem:[#allocation2 + $0x308] sm:$0xff] }
 0x2bb   :  { %v563_v30 = vmax.f32 %v520_v18, %v562_v24  ;;  %v558_v31 = vrot.slane %v557_v25, 2  ;;  %1573 = vmatmul.mubr.f32.vlgmr.msra.gmra.mrb[8].mxu1 %v667_v26  ;;  %v569_v33 = vmax.f32 %v521_v21, %v568_v27  ;;  %v1858_v61 = vpack.c.bf16 %v807_v60, %v806_v59  ;;  %v824_v18 = vld [vmem:[#allocation2 + $0x340] sm:$0xff]  ;;  %v827_v26 = vld [vmem:[#allocation2 + $0x358] sm:$0xff]  ;;  %v818_v27 = vld [vmem:[#allocation2 + $0x310] sm:$0xff] }
 0x2bc   :  { %1575 = vmatprep.mubr.f32.mxu1 %v668_v28  ;;  %v574_v34 = vrot.slane %v522_v29, 4  ;;  %1857 = vmatpush3.bf16.msra.mxu1 %v1854_v56  ;;  %v669_v35 = vmax.f32 %v522_v29, 0.0  ;;  %v1837_v21 = vpack.c.bf16 %v825_v19, %v824_v18  ;;  %v1878_v24 = vpack.c.bf16 %v817_v23, %v816_v20 }
 0x2bd   :  { %v559_v36 = vmax.f32 %v557_v25, %v558_v31  ;;  %v564_v37 = vrot.slane %v563_v30, 2  ;;  %v570_v38 = vrot.slane %v569_v33, 2  ;;  %1859 = vmatprep.subr.bf16.mxu1 %v1858_v61  ;;  %v826_v25 = vld [vmem:[#allocation2 + $0x350] sm:$0xff]  ;;  %v828_v31 = vld [vmem:[#allocation2 + $0x360] sm:$0xff] }
 0x2be   :  { %v575_v39 = vmax.f32 %v522_v29, %v574_v34  ;;  %v1840_v28 = vpack.c.bf16 %v827_v26, %v826_v25  ;;  %v819_v29 = vld [vmem:[#allocation2 + $0x318] sm:$0xff] }
 0x2bf   :  { %1576 = vmatmul.mubr.f32.gmra.mrb[10].mxu1 %v669_v35  ;;  %v560_v40 = vrot.slane %v559_v36, 1  ;;  %v565_v41 = vmax.f32 %v563_v30, %v564_v37  ;;  %v571_v42 = vmax.f32 %v569_v33, %v570_v38  ;;  %v1882_v30 = vpack.c.bf16 %v819_v29, %v818_v27  ;;  %v829_v33 = vld [vmem:[#allocation2 + $0x368] sm:$0xff]  ;;  %v830_v35 = vld [vmem:[#allocation2 + $0x370] sm:$0xff]  ;;  %v832_v38 = vld [vmem:[#allocation2 + $0x380] sm:$0xff] }
 0x2c0   :  { %v576_v43 = vrot.slane %v575_v39, 2  ;;  %1861 = vmatpush3.bf16.msra.mxu1 %v1858_v61  ;;  %v1843_v34 = vpack.c.bf16 %v829_v33, %v828_v31 }
 0x2c1   :  { %v561_v44 = vmax.f32 %v559_v36, %v560_v40  ;;  %v566_v45 = vrot.slane %v565_v41, 1  ;;  %v572_v46 = vrot.slane %v571_v42, 1  ;;  %1863 = vmatprep.subr.bf16.mxu1 %v1862_v0  ;;  %v831_v36 = vld [vmem:[#allocation2 + $0x378] sm:$0xff] }
 0x2c2   :  { %v577_v47 = vmax.f32 %v575_v39, %v576_v43  ;;  %v1846_v37 = vpack.c.bf16 %v831_v36, %v830_v35  ;;  %v833_v39 = vld [vmem:[#allocation2 + $0x388] sm:$0xff] }
 0x2c3   :  { %v567_v48 = vmax.f32 %v565_v41, %v566_v45  ;;  %v573_v49 = vmax.f32 %v571_v42, %v572_v46  ;;  %v580_v51 = vmax.f32 %v561_v44, 0.0  ;;  %v1849_v40 = vpack.c.bf16 %v833_v39, %v832_v38  ;;  %v834_v41 = vld [vmem:[#allocation2 + $0x390] sm:$0xff]  ;;  %v835_v42 = vld [vmem:[#allocation2 + $0x398] sm:$0xff] }
 0x2c4   :  { %v578_v50 = vrot.slane %v577_v47, 1  ;;  %1865 = vmatpush3.bf16.msra.mxu1 %v1862_v0  ;;  %v1852_v43 = vpack.c.bf16 %v835_v42, %v834_v41  ;;  %v1085_v41 = vld [vmem:[#allocation2 + $0x3a8] sm:$0xff]  ;;  %v1086_v42 = vld [vmem:[#allocation2 + $0x3b0] sm:$0xff] }
 0x2c5   :  { %v581_v52 = vmax.f32 %v567_v48, 0.0  ;;  %v582_v53 = vmax.f32 %v573_v49, 0.0  ;;  %1867 = vmatprep.subr.bf16.mxu1 %v1866_v5  ;;  %v1230_v48 = vld [vmem:[#allocation2 + $0x298] ss:$0 sm:$0xff] }
 0x2c6   :  { %v579_v54 = vmax.f32 %v577_v47, %v578_v50 }
 0x2c7   :  { %v592_v55 = vsel %vm308_vm2, %v581_v52, %v580_v51 }
 0x2c8   :  { %v583_v56 = vmax.f32 %v579_v54, 0.0  ;;  %v593_v57 = vsel %vm310_vm3, %v582_v53, %v592_v55  ;;  %1869 = vmatpush3.bf16.msra.mxu1 %v1866_v5 }
 0x2c9   :  { %1871 = vmatprep.subr.bf16.mxu1 %v1870_v11 }
 0x2ca   :  { %v594_v58 = vsel %vm312_vm4, %v583_v56, %v593_v57 }
 0x2cb   :  { %1538 = vmatmul.mubr.f32.vlgmr.msra.gmra.mrb[6].mxu0 %v594_v58 }
 0x2cc   :  { %1610 = vmatprep.mubr.msk.f32.mxu0 %vm1970_vm1, %v1971_v22  ;;  %1832 = vmatpush3.bf16.msra.mxu0 %v1831_v10 }
 0x2cd   :  { %1833 = vmatprep.subr.bf16.mxu0 %v1969_v32  ;;  %1873 = vmatpush3.bf16.msra.mxu1 %v1870_v11 }
 0x2ce   :  { %1875 = vmatprep.subr.bf16.mxu1 %v1874_v17 }
 0x2d0   :  { %1835 = vmatpush3.bf16.msra.mxu0 %v1834_v15 }
 0x2d1   :  { %1836 = vmatprep.subr.bf16.mxu0 %v1969_v32  ;;  %1877 = vmatpush3.bf16.msra.mxu1 %v1874_v17 }
 0x2d2   :  { %1879 = vmatprep.subr.bf16.mxu1 %v1878_v24 }
 0x2d4   :  { %1838 = vmatpush3.bf16.msra.mxu0 %v1837_v21 }
 0x2d5   :  { %1839 = vmatprep.subr.bf16.mxu0 %v1969_v32  ;;  %1881 = vmatpush3.bf16.msra.mxu1 %v1878_v24 }
 0x2d6   :  { %1883 = vmatprep.subr.bf16.mxu1 %v1882_v30 }
 0x2d8   :  { %1841 = vmatpush3.bf16.msra.mxu0 %v1840_v28 }
 0x2d9   :  { %1842 = vmatprep.subr.bf16.mxu0 %v1969_v32  ;;  %1885 = vmatpush3.bf16.msra.mxu1 %v1882_v30 }
 0x2dc   :  { %1844 = vmatpush3.bf16.msra.mxu0 %v1843_v34 }
 0x2dd   :  { %1845 = vmatprep.subr.bf16.mxu0 %v1969_v32 }
 0x2e0   :  { %1847 = vmatpush3.bf16.msra.mxu0 %v1846_v37 }
 0x2e1   :  { %1848 = vmatprep.subr.bf16.mxu0 %v1969_v32 }
 0x2e4   :  { %1850 = vmatpush3.bf16.msra.mxu0 %v1849_v40 }
 0x2e5   :  { %1851 = vmatprep.subr.bf16.mxu0 %v1969_v32 }
 0x2e8   :  { %1853 = vmatpush3.bf16.msra.mxu0 %v1852_v43  ;;  %v1887_v43 = vpack.c.bf16 %v1086_v42, %v1085_v41 }
 0x2e9   :  { %1886 = vmatprep.subr.bf16.mxu0 %v1969_v32 }
 0x38e   :  { %v1574_v44 = vpop.f32.mrb[8].mxu1 }
 0x38f   :  { %v736_v45 = vpop.f32.mrb[9].mxu1 }
 0x392   :  { %v1577_v46 = vpop.f32.mrb[10].mxu1 }
 0x393   :  { %v746_v47 = vpop.f32.mrb[11].mxu1 }
 0x39e   :  { %v662_v49 = vpop.f32.mrb[6].mxu0 }
 0x39f   :  { %v663_v50 = vadd.f32 %v1230_v48, %v662_v49  ;;  %v1539_v51 = vpop.f32.mrb[7].mxu0  ;;  %v1090_v48 = vld [vmem:[#allocation2 + $0x3d0] sm:$0xff] }
 0x3a1   :  { %v762_v52 = vrot.slane %v663_v50, %v2041_v3  ;;  %v1091_v50 = vld [vmem:[#allocation2 + $0x3d8] sm:$0xff] }
 0x3a3   :  { %v763_v53 = vcombine.high %v762_v52, %v762_v52  ;;  %v770_v54 = vrot.slane %v762_v52, %v2041_v3  ;;  %v1093_v52 = vld [vmem:[#allocation2 + $0x3e8] sm:$0xff] }
 0x3a5   :  { %v777_v55 = vrot.slane %v763_v53, %v2041_v3  ;;  %v778_v56 = vcombine.high %v770_v54, %v770_v54  ;;  %v783_v57 = vrot.slane %v770_v54, %v2044_v8  ;;  %v1094_v53 = vld [vmem:[#allocation2 + $0x3f0] sm:$0xff] }
 0x3a6   :  { %v1899_v54 = vpack.c.bf16 %v1094_v53, %v1093_v52 }
 0x3a7   :  { %v779_v58 = vcombine.high %v777_v55, %v777_v55  ;;  %v787_v59 = vrot.slane %v777_v55, %v2044_v8  ;;  %v791_v60 = vrot.slane %v778_v56, %v2044_v8  ;;  %v800_v61 = vadd.f32 %v783_v57, %v736_v45  ;;  %v1088_v45 = vld [vmem:[#allocation2 + $0x3c0] sm:$0xff]  ;;  %v1095_v55 = vld [vmem:[#allocation2 + $0x3f8] sm:$0xff] }
 0x3a8   :  { %v1096_v56 = vld [vmem:[#allocation2 + $0x400] sm:$0xff] }
 0x3a9   :  { %v801_v62 = vadd.f32 %v1574_v44, %v787_v59  ;;  %v837_v63 = vrot.slane %v800_v61, 4  ;;  %v947_v0 = vmax.f32 %v800_v61, 0.0  ;;  %v802_v1 = vadd.f32 %v791_v60, %v746_v47  ;;  %v1087_v44 = vld [vmem:[#allocation2 + $0x3b8] sm:$0xff]  ;;  %v1089_v47 = vld [vmem:[#allocation2 + $0x3c8] sm:$0xff]  ;;  %v1098_v59 = vld [vmem:[#allocation2 + $0x410] sm:$0xff] }
 0x3aa   :  { %v795_v2 = vrot.slane %v779_v58, %v2044_v8  ;;  %v1893_v49 = vpack.c.bf16 %v1090_v48, %v1089_v47  ;;  %v1902_v57 = vpack.c.bf16 %v1096_v56, %v1095_v55  ;;  %v1097_v58 = vld [vmem:[#allocation2 + $0x408] sm:$0xff] }
 0x3ab   :  { %v843_v4 = vrot.slane %v801_v62, 4  ;;  %v838_v5 = vmax.f32 %v800_v61, %v837_v63  ;;  %1645 = vmatprep.mubr.f32.mxu1 %v947_v0  ;;  %v948_v6 = vmax.f32 %v801_v62, 0.0  ;;  %v849_v7 = vrot.slane %v802_v1, 4  ;;  %v1099_v61 = vld [vmem:[#allocation2 + $0x418] sm:$0xff] }
 0x3ac   :  { %v949_v9 = vmax.f32 %v802_v1, 0.0  ;;  %v803_v10 = vadd.f32 %v1577_v46, %v795_v2  ;;  %v1890_v46 = vpack.c.bf16 %v1088_v45, %v1087_v44  ;;  %v1905_v60 = vpack.c.bf16 %v1098_v59, %v1097_v58 }
 0x3ad   :  { %v844_v11 = vmax.f32 %v801_v62, %v843_v4  ;;  %v839_v12 = vrot.slane %v838_v5, 2  ;;  %1646 = vmatmul.mubr.f32.vlgmr.msra.gmra.mrb[12].mxu1 %v948_v6  ;;  %v850_v13 = vmax.f32 %v802_v1, %v849_v7  ;;  %v1100_v62 = vld [vmem:[#allocation2 + $0x420] sm:$0xff] }
 0x3ae   :  { %1648 = vmatprep.mubr.f32.mxu1 %v949_v9  ;;  %v855_v14 = vrot.slane %v803_v10, 4  ;;  %v950_v15 = vmax.f32 %v803_v10, 0.0  ;;  %v1908_v63 = vpack.c.bf16 %v1100_v62, %v1099_v61 }
 0x3af   :  { %v840_v16 = vmax.f32 %v838_v5, %v839_v12  ;;  %v845_v17 = vrot.slane %v844_v11, 2  ;;  %v851_v18 = vrot.slane %v850_v13, 2  ;;  %v1231_v5 = vld [vmem:[#allocation2 + $0x3a0] ss:$0 sm:$0xff] }
 0x3b0   :  { %v856_v19 = vmax.f32 %v803_v10, %v855_v14 }
 0x3b1   :  { %1649 = vmatmul.mubr.f32.gmra.mrb[14].mxu1 %v950_v15  ;;  %v841_v20 = vrot.slane %v840_v16, 1  ;;  %v846_v21 = vmax.f32 %v844_v11, %v845_v17  ;;  %v852_v23 = vmax.f32 %v850_v13, %v851_v18 }
 0x3b2   :  { %v857_v24 = vrot.slane %v856_v19, 2 }
 0x3b3   :  { %v842_v25 = vmax.f32 %v840_v16, %v841_v20  ;;  %v847_v26 = vrot.slane %v846_v21, 1  ;;  %v853_v27 = vrot.slane %v852_v23, 1 }
 0x3b4   :  { %v858_v28 = vmax.f32 %v856_v19, %v857_v24 }
 0x3b5   :  { %v848_v29 = vmax.f32 %v846_v21, %v847_v26  ;;  %v854_v30 = vmax.f32 %v852_v23, %v853_v27  ;;  %v861_v33 = vmax.f32 %v842_v25, 0.0 }
 0x3b6   :  { %v859_v31 = vrot.slane %v858_v28, 1 }
 0x3b7   :  { %v862_v34 = vmax.f32 %v848_v29, 0.0  ;;  %v863_v35 = vmax.f32 %v854_v30, 0.0 }
 0x3b8   :  { %v860_v36 = vmax.f32 %v858_v28, %v859_v31 }
 0x3b9   :  { %v873_v37 = vsel %vm308_vm2, %v862_v34, %v861_v33 }
 0x3ba   :  { %v864_v38 = vmax.f32 %v860_v36, 0.0  ;;  %v874_v39 = vsel %vm310_vm3, %v863_v35, %v873_v37 }
 0x3bc   :  { %v875_v40 = vsel %vm312_vm4, %v864_v38, %v874_v39 }
 0x3bd   :  { %1611 = vmatmul.mubr.f32.vlgmr.msra.gmra.mrb[8].mxu0 %v875_v40 }
 0x3be   :  { %1683 = vmatprep.mubr.msk.f32.mxu0 %vm1970_vm1, %v1971_v22  ;;  %1888 = vmatpush3.bf16.msra.mxu0 %v1887_v43  ;;  %v1092_v22 = vld [vmem:[#allocation2 + $0x3e0] sm:$0xff] }
 0x3bf   :  { %1889 = vmatprep.subr.bf16.mxu0 %v1969_v32  ;;  %v1896_v51 = vpack.c.bf16 %v1092_v22, %v1091_v50  ;;  %v1232_v50 = vld [vmem:[#allocation2 + $0x428] ss:$0 sm:$0xff] }
 0x3c2   :  { %1891 = vmatpush3.bf16.msra.mxu0 %v1890_v46 }
 0x3c3   :  { %1892 = vmatprep.subr.bf16.mxu0 %v1969_v32 }
 0x3c6   :  { %1894 = vmatpush3.bf16.msra.mxu0 %v1893_v49 }
 0x3c7   :  { %1895 = vmatprep.subr.bf16.mxu0 %v1969_v32 }
 0x3ca   :  { %1897 = vmatpush3.bf16.msra.mxu0 %v1896_v51 }
 0x3cb   :  { %1898 = vmatprep.subr.bf16.mxu0 %v1969_v32 }
 0x3ce   :  { %1900 = vmatpush3.bf16.msra.mxu0 %v1899_v54 }
 0x3cf   :  { %1901 = vmatprep.subr.bf16.mxu0 %v1969_v32 }
 0x3d2   :  { %1903 = vmatpush3.bf16.msra.mxu0 %v1902_v57 }
 0x3d3   :  { %1904 = vmatprep.subr.bf16.mxu0 %v1969_v32 }
 0x3d6   :  { %1906 = vmatpush3.bf16.msra.mxu0 %v1905_v60 }
 0x3d7   :  { %1907 = vmatprep.subr.bf16.mxu0 %v1969_v32 }
 0x3da   :  { %1909 = vmatpush3.bf16.msra.mxu0 %v1908_v63 }
 0x480   :  { %v1647_v0 = vpop.f32.mrb[12].mxu1 }
 0x481   :  { %v1017_v1 = vpop.f32.mrb[13].mxu1 }
 0x484   :  { %v1650_v2 = vpop.f32.mrb[14].mxu1 }
 0x485   :  { %v1027_v4 = vpop.f32.mrb[15].mxu1 }
 0x490   :  { %v943_v6 = vpop.f32.mrb[8].mxu0 }
 0x491   :  { %v944_v7 = vadd.f32 %v1231_v5, %v943_v6  ;;  %v1612_v9 = vpop.f32.mrb[9].mxu0 }
 0x493   :  { %v1043_v10 = vrot.slane %v944_v7, %v2041_v3 }
 0x495   :  { %v1044_v11 = vcombine.high %v1043_v10, %v1043_v10  ;;  %v1051_v12 = vrot.slane %v1043_v10, %v2041_v3 }
 0x497   :  { %v1058_v13 = vrot.slane %v1044_v11, %v2041_v3  ;;  %v1059_v14 = vcombine.high %v1051_v12, %v1051_v12  ;;  %v1064_v15 = vrot.slane %v1051_v12, %v2044_v8 }
 0x499   :  { %v1060_v32 = vcombine.high %v1058_v13, %v1058_v13  ;;  %v1068_v16 = vrot.slane %v1058_v13, %v2044_v8  ;;  %v1072_v17 = vrot.slane %v1059_v14, %v2044_v8  ;;  %v1081_v18 = vadd.f32 %v1064_v15, %v1017_v1 }
 0x49b   :  { %v1076_v19 = vrot.slane %v1060_v32, %v2044_v8  ;;  %v1082_v20 = vadd.f32 %v1647_v0, %v1068_v16  ;;  %v1083_v21 = vadd.f32 %v1072_v17, %v1027_v4  ;;  %v1102_v23 = vrot.slane %v1081_v18, 4 }
 0x49d   :  { %v1084_v24 = vadd.f32 %v1650_v2, %v1076_v19  ;;  %v1103_v25 = vmax.f32 %v1081_v18, %v1102_v23  ;;  %v1108_v26 = vrot.slane %v1082_v20, 4  ;;  %v1114_v27 = vrot.slane %v1083_v21, 4 }
 0x49f   :  { %v1104_v28 = vrot.slane %v1103_v25, 2  ;;  %v1109_v3 = vmax.f32 %v1082_v20, %v1108_v26  ;;  %v1115_v29 = vmax.f32 %v1083_v21, %v1114_v27  ;;  %v1120_v30 = vrot.slane %v1084_v24, 4 }
 0x4a1   :  { %v1105_v31 = vmax.f32 %v1103_v25, %v1104_v28  ;;  %v1110_v33 = vrot.slane %v1109_v3, 2  ;;  %v1116_v34 = vrot.slane %v1115_v29, 2  ;;  %v1121_v35 = vmax.f32 %v1084_v24, %v1120_v30 }
 0x4a3   :  { %v1106_v36 = vrot.slane %v1105_v31, 1  ;;  %v1111_v37 = vmax.f32 %v1109_v3, %v1110_v33  ;;  %v1117_v38 = vmax.f32 %v1115_v29, %v1116_v34  ;;  %v1122_v39 = vrot.slane %v1121_v35, 2 }
 0x4a5   :  { %v1112_v8 = vrot.slane %v1111_v37, 1  ;;  %v1118_v40 = vrot.slane %v1117_v38, 1  ;;  %v1123_v41 = vmax.f32 %v1121_v35, %v1122_v39  ;;  %v1107_v42 = vmax.f32 %v1105_v31, %v1106_v36 }
 0x4a7   :  { %v1113_v43 = vmax.f32 %v1111_v37, %v1112_v8  ;;  %v1119_v44 = vmax.f32 %v1117_v38, %v1118_v40  ;;  %v1124_v45 = vrot.slane %v1123_v41, 1 }
 0x4a9   :  { %v1125_v46 = vmax.f32 %v1123_v41, %v1124_v45  ;;  %v1134_v47 = vsel %vm308_vm2, %v1113_v43, %v1107_v42 }
 0x4aa   :  { %v1135_v48 = vsel %vm310_vm3, %v1119_v44, %v1134_v47 }
 0x4ab   :  { %v1136_v49 = vsel %vm312_vm4, %v1125_v46, %v1135_v48 }
 0x4ac   :  { %1684 = vmatmul.mubr.f32.vlgmr.msra.gmra.mrb[10].mxu0 %v1136_v49 }
 0x57f   :  { %v1204_v22 = vpop.f32.mrb[10].mxu0 }
 0x580   :  { %v1205_v51 = vadd.f32 %v1232_v50, %v1204_v22  ;;  %v1685_v52 = vpop.f32.mrb[11].mxu0 }
 0x582   :  { %1208 = vst [vmem:[#allocation5] sm:$0xf] %v1205_v51 }
 0x583   :  { %1951 = shalt.err (!%p1948_p12)
}
 0x584   :  { %s1952_s6 = scalar_lea.hbm %s2108_s2, 64 }
 0x585   :  { %p1953_p13 = scmp.ne.s32.totalorder %s2108_s2, %s1952_s6  ;;  %p1956_p0 = scmp.lt.u32.totalorder %s1952_s6, %s2108_s2 }
 0x587   :  { %p1958_p1 = pnand %p1956_p0, %p1953_p13 }
 0x589   :  { %1961 = shalt.err (!%p1958_p1)
}
 0x58a   :  { %1218 = dma.vmem_to_hbm [thread:$0]  %s1216_s30, 64, %s2108_s2, [#allocation4]  }
 0x58b   :  { %1964 = dma.done.wait [#allocation4], 64  }
 0x58c   :  { %1965 = vsyncadd [#allocation4], 4294967232 }
 0x58d   :  { %1222 = vsyncpa [#allocation3], 1 }
 0x58e   :  { %1223 = vsyncpa [#allocation4], 1 }

</bundles_post_ra>
